<compile_context>
chip_gen: v7x
topology: tpu7x:2x2x1
jax: 0.10.0
libtpu: 0.0.40
codegen_flags: <defaults>
</compile_context>

<pallas_src>
import functools

import jax
import jax.numpy as jnp
from jax.experimental import pallas as pl
from jax.experimental.pallas import tpu as pltpu

BN_EPS = 1e-5
LANE = 128


def _round_up(n, m=LANE):
    return ((n + m - 1) // m) * m


def _decoder_kernel(x_ref, w1_ref, w2_ref, w3_ref, w4_ref, vec_ref, o_ref,
                    *, use_bf16):
    """All layers fused, everything resident in VMEM, single program (no grid).

    vec_ref rows: [g1, be1, g2, be2, g3, be3, b4, unused], each lane-padded.
    """
    inv_b = 1.0 / x_ref.shape[0]

    def mm(h, w_ref):
        w = w_ref[...]
        if use_bf16:
            # bf16 MXU inputs, f32 accumulation (v6e/v7x lever; keep off on v5e paths
            # where non-MXU math must stay f32 anyway).
            h = h.astype(jnp.bfloat16)
            w = w.astype(jnp.bfloat16)
        return jnp.dot(h, w, preferred_element_type=jnp.float32)

    def bn_relu(h, layer):
        f = h.shape[1]  # static padded width
        g = vec_ref[2 * layer:2 * layer + 1, :f]
        be = vec_ref[2 * layer + 1:2 * layer + 2, :f]
        # One-pass batch stats: mean and E[h^2] share the same reduction window.
        mean = jnp.sum(h, axis=0, keepdims=True) * inv_b
        var = jnp.sum(h * h, axis=0, keepdims=True) * inv_b - mean * mean
        y = (h - mean) * jax.lax.rsqrt(var + BN_EPS) * g + be
        return jnp.maximum(y, 0.0)

    h = x_ref[...].astype(jnp.float32)
    h = bn_relu(mm(h, w1_ref), 0)   # Linear bias cancelled by BN -> not applied
    h = bn_relu(mm(h, w2_ref), 1)
    h = bn_relu(mm(h, w3_ref), 2)
    b4 = vec_ref[6:7, :w4_ref.shape[1]]
    h = jnp.tanh(mm(h, w4_ref) + b4)
    o_ref[...] = h.astype(o_ref.dtype)


def init_decoder_params(key, input_size, layer_size, hidden_dim):
    """Unpadded, PyTorch-equivalent params (weights stored transposed: (fin, fout))."""
    dims = [hidden_dim, 4 * layer_size, 2 * layer_size, layer_size, input_size]
    params = []
    n_linear = len(dims) - 1
    keys = jax.random.split(key, 2 * n_linear)
    for i in range(n_linear):
        fin, fout = dims[i], dims[i + 1]
        bound = 1.0 / (fin ** 0.5)
        w = jax.random.uniform(keys[2 * i], (fin, fout), jnp.float32, -bound, bound)
        b = jax.random.uniform(keys[2 * i + 1], (1, fout), jnp.float32, -bound, bound)
        params.extend([w, b])
        if i < n_linear - 1:
            params.append(jnp.ones((1, fout), jnp.float32))   # BN gamma
            params.append(jnp.zeros((1, fout), jnp.float32))  # BN beta
    return params


def pack_decoder_params(params):
    """Lane-pad weights to multiples of 128 and pack the small vectors into one array."""
    (w1, _b1, g1, be1,
     w2, _b2, g2, be2,
     w3, _b3, g3, be3,
     w4, b4) = params

    def pad_w(w):
        fin, fout = w.shape
        return jnp.pad(w, ((0, _round_up(fin) - fin), (0, _round_up(fout) - fout)))

    w1p, w2p, w3p, w4p = pad_w(w1), pad_w(w2), pad_w(w3), pad_w(w4)
    vmax = max(w1p.shape[1], w2p.shape[1], w3p.shape[1], w4p.shape[1])

    def pad_v(v):
        return jnp.pad(v, ((0, 0), (0, vmax - v.shape[1])))

    # Rows: g1, be1, g2, be2, g3, be3, b4, zero filler (8 rows = full sublane tile).
    vec = jnp.concatenate(
        [pad_v(g1), pad_v(be1), pad_v(g2), pad_v(be2), pad_v(g3), pad_v(be3),
         pad_v(b4), jnp.zeros((1, vmax), jnp.float32)], axis=0)
    return w1p, w2p, w3p, w4p, vec


def decoder_forward(x, params, *, use_bf16_matmul=False):
    """x: (B, hidden_dim) float32. params: flat list from init_decoder_params."""
    batch, hidden_dim = x.shape
    out_features = params[-1].shape[-1]          # final bias -> (1, input_size)
    w1p, w2p, w3p, w4p, vec = pack_decoder_params(params)

    # Lane-pad the input features; padded columns are zero and meet zero weight rows.
    hp = w1p.shape[0]
    x_pad = jnp.pad(x, ((0, 0), (0, hp - hidden_dim)))
    out_pad = w4p.shape[1]

    vmem_spec = pl.BlockSpec(memory_space=pltpu.MemorySpace.VMEM)
    kernel = functools.partial(_decoder_kernel, use_bf16=use_bf16_matmul)

    out = pl.pallas_call(
        kernel,
        out_shape=jax.ShapeDtypeStruct((batch, out_pad), jnp.float32),
        in_specs=[vmem_spec] * 6,
        out_specs=vmem_spec,
    )(x_pad, w1p, w2p, w3p, w4p, vec)
    return out[:, :out_features]


def decoder_reference(x, params):
    """Pure-JAX reference reproducing the PyTorch forward (training-mode BN, all biases)."""
    (w1, b1, g1, be1,
     w2, b2, g2, be2,
     w3, b3, g3, be3,
     w4, b4) = params

    def bn_relu(h, g, be):
        mean = jnp.mean(h, axis=0, keepdims=True)
        var = jnp.mean((h - mean) ** 2, axis=0, keepdims=True)
        return jnp.maximum((h - mean) / jnp.sqrt(var + BN_EPS) * g + be, 0.0)

    h = bn_relu(x @ w1 + b1, g1, be1)
    h = bn_relu(h @ w2 + b2, g2, be2)
    h = bn_relu(h @ w3 + b3, g3, be3)
    return jnp.tanh(h @ w4 + b4)


if __name__ == "__main__":
    # Small shapes consistent with the module: hidden widths 64 -> 32 -> 16 -> 8.
    input_size = 8    # final output dim
    layer_size = 16   # pyramid base width
    hidden_dim = 32   # decoder input dim
    batch = 16        # full batch stays in one block (BN uses batch statistics)

    key = jax.random.PRNGKey(0)
    k_x, k_p = jax.random.split(key)
    x = jax.random.normal(k_x, (batch, hidden_dim), dtype=jnp.float32)
    params = init_decoder_params(k_p, input_size, layer_size, hidden_dim)

    out = decoder_forward(x, params)          # f32 matmuls for exact parity check
    out = jax.block_until_ready(out)

    ref = decoder_reference(x, params)
    assert out.shape == (batch, input_size), out.shape
    err = float(jnp.max(jnp.abs(out - ref)))
    assert jnp.allclose(out, ref, atol=1e-5, rtol=1e-5), err

    print("KERNEL_OK")
</pallas_src>

<mosaic_0001>
module attributes {stable_mosaic.version = 11 : i64} {
  func.func @_decoder_kernel(%arg0: memref<16x128xf32, #tpu.memory_space<vmem>>, %arg1: memref<128x128xf32, #tpu.memory_space<vmem>>, %arg2: memref<128x128xf32, #tpu.memory_space<vmem>>, %arg3: memref<128x128xf32, #tpu.memory_space<vmem>>, %arg4: memref<128x128xf32, #tpu.memory_space<vmem>>, %arg5: memref<8x128xf32, #tpu.memory_space<vmem>>, %arg6: memref<16x128xf32, #tpu.memory_space<vmem>>) attributes {dimension_semantics = [], scalar_prefetch = 0 : i64, scratch_operands = 0 : i64, tpu.core_type = #tpu.core_type<tc>} {
    %c0 = arith.constant 0 : index
    %c0_0 = arith.constant 0 : index
    %0 = vector.load %arg0[%c0, %c0_0] : memref<16x128xf32, #tpu.memory_space<vmem>>, vector<16x128xf32>
    %c0_1 = arith.constant 0 : index
    %c0_2 = arith.constant 0 : index
    %1 = vector.load %arg1[%c0_1, %c0_2] : memref<128x128xf32, #tpu.memory_space<vmem>>, vector<128x128xf32>
    %cst = arith.constant dense<0.000000e+00> : vector<16x128xf32>
    %2 = tpu.matmul %0, %1, %cst {dimension_numbers = #tpu.dot_dimension_numbers<[1], [0], [0], [1], [0, 0, 1, 1], [], []>} : vector<16x128xf32>, vector<128x128xf32>, vector<16x128xf32> -> vector<16x128xf32>
    %c0_3 = arith.constant 0 : index
    %c0_4 = arith.constant 0 : index
    %3 = vector.load %arg5[%c0_3, %c0_4] : memref<8x128xf32, #tpu.memory_space<vmem>>, vector<1x128xf32>
    %c1 = arith.constant 1 : index
    %c0_5 = arith.constant 0 : index
    %4 = vector.load %arg5[%c1, %c0_5] : memref<8x128xf32, #tpu.memory_space<vmem>>, vector<1x128xf32>
    %cst_6 = arith.constant dense<0.000000e+00> : vector<128xf32>
    %5 = vector.multi_reduction <add>, %2, %cst_6 [0] : vector<16x128xf32> to vector<128xf32>
    %6 = vector.shape_cast %5 : vector<128xf32> to vector<1x128xf32>
    %cst_7 = arith.constant 6.250000e-02 : f32
    %7 = vector.broadcast %cst_7 : f32 to vector<1x128xf32>
    %8 = arith.mulf %6, %7 : vector<1x128xf32>
    %9 = arith.mulf %2, %2 : vector<16x128xf32>
    %cst_8 = arith.constant dense<0.000000e+00> : vector<128xf32>
    %10 = vector.multi_reduction <add>, %9, %cst_8 [0] : vector<16x128xf32> to vector<128xf32>
    %11 = vector.shape_cast %10 : vector<128xf32> to vector<1x128xf32>
    %cst_9 = arith.constant 6.250000e-02 : f32
    %12 = vector.broadcast %cst_9 : f32 to vector<1x128xf32>
    %13 = arith.mulf %11, %12 : vector<1x128xf32>
    %14 = arith.mulf %8, %8 : vector<1x128xf32>
    %15 = arith.subf %13, %14 : vector<1x128xf32>
    %16 = vector.broadcast %8 : vector<1x128xf32> to vector<16x128xf32>
    %17 = arith.subf %2, %16 : vector<16x128xf32>
    %cst_10 = arith.constant 9.99999974E-6 : f32
    %18 = vector.broadcast %cst_10 : f32 to vector<1x128xf32>
    %19 = arith.addf %15, %18 : vector<1x128xf32>
    %20 = math.rsqrt %19 : vector<1x128xf32>
    %21 = vector.broadcast %20 : vector<1x128xf32> to vector<16x128xf32>
    %22 = arith.mulf %17, %21 : vector<16x128xf32>
    %23 = vector.broadcast %3 : vector<1x128xf32> to vector<16x128xf32>
    %24 = arith.mulf %22, %23 : vector<16x128xf32>
    %25 = vector.broadcast %4 : vector<1x128xf32> to vector<16x128xf32>
    %26 = arith.addf %24, %25 : vector<16x128xf32>
    %cst_11 = arith.constant 0.000000e+00 : f32
    %27 = vector.broadcast %cst_11 : f32 to vector<16x128xf32>
    %28 = arith.maximumf %26, %27 : vector<16x128xf32>
    %c0_12 = arith.constant 0 : index
    %c0_13 = arith.constant 0 : index
    %29 = vector.load %arg2[%c0_12, %c0_13] : memref<128x128xf32, #tpu.memory_space<vmem>>, vector<128x128xf32>
    %cst_14 = arith.constant dense<0.000000e+00> : vector<16x128xf32>
    %30 = tpu.matmul %28, %29, %cst_14 {dimension_numbers = #tpu.dot_dimension_numbers<[1], [0], [0], [1], [0, 0, 1, 1], [], []>} : vector<16x128xf32>, vector<128x128xf32>, vector<16x128xf32> -> vector<16x128xf32>
    %c2 = arith.constant 2 : index
    %c0_15 = arith.constant 0 : index
    %31 = vector.load %arg5[%c2, %c0_15] : memref<8x128xf32, #tpu.memory_space<vmem>>, vector<1x128xf32>
    %c3 = arith.constant 3 : index
    %c0_16 = arith.constant 0 : index
    %32 = vector.load %arg5[%c3, %c0_16] : memref<8x128xf32, #tpu.memory_space<vmem>>, vector<1x128xf32>
    %cst_17 = arith.constant dense<0.000000e+00> : vector<128xf32>
    %33 = vector.multi_reduction <add>, %30, %cst_17 [0] : vector<16x128xf32> to vector<128xf32>
    %34 = vector.shape_cast %33 : vector<128xf32> to vector<1x128xf32>
    %cst_18 = arith.constant 6.250000e-02 : f32
    %35 = vector.broadcast %cst_18 : f32 to vector<1x128xf32>
    %36 = arith.mulf %34, %35 : vector<1x128xf32>
    %37 = arith.mulf %30, %30 : vector<16x128xf32>
    %cst_19 = arith.constant dense<0.000000e+00> : vector<128xf32>
    %38 = vector.multi_reduction <add>, %37, %cst_19 [0] : vector<16x128xf32> to vector<128xf32>
    %39 = vector.shape_cast %38 : vector<128xf32> to vector<1x128xf32>
    %cst_20 = arith.constant 6.250000e-02 : f32
    %40 = vector.broadcast %cst_20 : f32 to vector<1x128xf32>
    %41 = arith.mulf %39, %40 : vector<1x128xf32>
    %42 = arith.mulf %36, %36 : vector<1x128xf32>
    %43 = arith.subf %41, %42 : vector<1x128xf32>
    %44 = vector.broadcast %36 : vector<1x128xf32> to vector<16x128xf32>
    %45 = arith.subf %30, %44 : vector<16x128xf32>
    %cst_21 = arith.constant 9.99999974E-6 : f32
    %46 = vector.broadcast %cst_21 : f32 to vector<1x128xf32>
    %47 = arith.addf %43, %46 : vector<1x128xf32>
    %48 = math.rsqrt %47 : vector<1x128xf32>
    %49 = vector.broadcast %48 : vector<1x128xf32> to vector<16x128xf32>
    %50 = arith.mulf %45, %49 : vector<16x128xf32>
    %51 = vector.broadcast %31 : vector<1x128xf32> to vector<16x128xf32>
    %52 = arith.mulf %50, %51 : vector<16x128xf32>
    %53 = vector.broadcast %32 : vector<1x128xf32> to vector<16x128xf32>
    %54 = arith.addf %52, %53 : vector<16x128xf32>
    %cst_22 = arith.constant 0.000000e+00 : f32
    %55 = vector.broadcast %cst_22 : f32 to vector<16x128xf32>
    %56 = arith.maximumf %54, %55 : vector<16x128xf32>
    %c0_23 = arith.constant 0 : index
    %c0_24 = arith.constant 0 : index
    %57 = vector.load %arg3[%c0_23, %c0_24] : memref<128x128xf32, #tpu.memory_space<vmem>>, vector<128x128xf32>
    %cst_25 = arith.constant dense<0.000000e+00> : vector<16x128xf32>
    %58 = tpu.matmul %56, %57, %cst_25 {dimension_numbers = #tpu.dot_dimension_numbers<[1], [0], [0], [1], [0, 0, 1, 1], [], []>} : vector<16x128xf32>, vector<128x128xf32>, vector<16x128xf32> -> vector<16x128xf32>
    %c4 = arith.constant 4 : index
    %c0_26 = arith.constant 0 : index
    %59 = vector.load %arg5[%c4, %c0_26] : memref<8x128xf32, #tpu.memory_space<vmem>>, vector<1x128xf32>
    %c5 = arith.constant 5 : index
    %c0_27 = arith.constant 0 : index
    %60 = vector.load %arg5[%c5, %c0_27] : memref<8x128xf32, #tpu.memory_space<vmem>>, vector<1x128xf32>
    %cst_28 = arith.constant dense<0.000000e+00> : vector<128xf32>
    %61 = vector.multi_reduction <add>, %58, %cst_28 [0] : vector<16x128xf32> to vector<128xf32>
    %62 = vector.shape_cast %61 : vector<128xf32> to vector<1x128xf32>
    %cst_29 = arith.constant 6.250000e-02 : f32
    %63 = vector.broadcast %cst_29 : f32 to vector<1x128xf32>
    %64 = arith.mulf %62, %63 : vector<1x128xf32>
    %65 = arith.mulf %58, %58 : vector<16x128xf32>
    %cst_30 = arith.constant dense<0.000000e+00> : vector<128xf32>
    %66 = vector.multi_reduction <add>, %65, %cst_30 [0] : vector<16x128xf32> to vector<128xf32>
    %67 = vector.shape_cast %66 : vector<128xf32> to vector<1x128xf32>
    %cst_31 = arith.constant 6.250000e-02 : f32
    %68 = vector.broadcast %cst_31 : f32 to vector<1x128xf32>
    %69 = arith.mulf %67, %68 : vector<1x128xf32>
    %70 = arith.mulf %64, %64 : vector<1x128xf32>
    %71 = arith.subf %69, %70 : vector<1x128xf32>
    %72 = vector.broadcast %64 : vector<1x128xf32> to vector<16x128xf32>
    %73 = arith.subf %58, %72 : vector<16x128xf32>
    %cst_32 = arith.constant 9.99999974E-6 : f32
    %74 = vector.broadcast %cst_32 : f32 to vector<1x128xf32>
    %75 = arith.addf %71, %74 : vector<1x128xf32>
    %76 = math.rsqrt %75 : vector<1x128xf32>
    %77 = vector.broadcast %76 : vector<1x128xf32> to vector<16x128xf32>
    %78 = arith.mulf %73, %77 : vector<16x128xf32>
    %79 = vector.broadcast %59 : vector<1x128xf32> to vector<16x128xf32>
    %80 = arith.mulf %78, %79 : vector<16x128xf32>
    %81 = vector.broadcast %60 : vector<1x128xf32> to vector<16x128xf32>
    %82 = arith.addf %80, %81 : vector<16x128xf32>
    %cst_33 = arith.constant 0.000000e+00 : f32
    %83 = vector.broadcast %cst_33 : f32 to vector<16x128xf32>
    %84 = arith.maximumf %82, %83 : vector<16x128xf32>
    %c6 = arith.constant 6 : index
    %c0_34 = arith.constant 0 : index
    %85 = vector.load %arg5[%c6, %c0_34] : memref<8x128xf32, #tpu.memory_space<vmem>>, vector<1x128xf32>
    %c0_35 = arith.constant 0 : index
    %c0_36 = arith.constant 0 : index
    %86 = vector.load %arg4[%c0_35, %c0_36] : memref<128x128xf32, #tpu.memory_space<vmem>>, vector<128x128xf32>
    %cst_37 = arith.constant dense<0.000000e+00> : vector<16x128xf32>
    %87 = tpu.matmul %84, %86, %cst_37 {dimension_numbers = #tpu.dot_dimension_numbers<[1], [0], [0], [1], [0, 0, 1, 1], [], []>} : vector<16x128xf32>, vector<128x128xf32>, vector<16x128xf32> -> vector<16x128xf32>
    %88 = vector.broadcast %85 : vector<1x128xf32> to vector<16x128xf32>
    %89 = arith.addf %87, %88 : vector<16x128xf32>
    %90 = math.tanh %89 : vector<16x128xf32>
    %c0_38 = arith.constant 0 : index
    %c0_39 = arith.constant 0 : index
    %91 = vector.load %arg6[%c0_38, %c0_39] : memref<16x128xf32, #tpu.memory_space<vmem>>, vector<16x128xf32>
    tpu.vector_store %arg6[%c0_38, %c0_39], %90 {strides = array<i32>} : memref<16x128xf32, #tpu.memory_space<vmem>>, vector<16x128xf32>,
    return
  }
}

</mosaic_0001>

<bundles_post_ra>
// kernel: tpu_custom_call.1
= control target key start
LH: loop header
LB: loop body
LE: loop exit
PB: predicated region body
PF: predicated region fallthrough
CT: control target
= control target key end

     0   :  { %11 = vsyncpa [#allocation3], 0  ;;  %s1285_s0 = inlined_call_operand.hbm [shape: f32[16,128], index: 0, kind: input, shape index: {}]   ;;  %s1286_s1 = inlined_call_operand.hbm [shape: f32[128,128], index: 1, kind: input, shape index: {}]   ;;  %s1287_s2 = inlined_call_operand.hbm [shape: f32[128,128], index: 2, kind: input, shape index: {}]   ;;  %s1288_s3 = inlined_call_operand.hbm [shape: f32[128,128], index: 3, kind: input, shape index: {}]   ;;  %s1289_s4 = inlined_call_operand.hbm [shape: f32[128,128], index: 4, kind: input, shape index: {}]   ;;  %s1290_s5 = inlined_call_operand.vmem [shape: f32[8,128], index: 5, kind: input, shape index: {}]   ;;  %s1291_s6 = inlined_call_operand.hbm [shape: f32[16,128], index: 6, kind: output, shape index: {}]  }
   0x1   :  { %12 = vsyncpa [#allocation6], 0 }
   0x2   :  { %13 = vsyncpa [#allocation9], 0 }
   0x3   :  { %14 = vsyncpa [#allocation4], 0  ;;  %s1117_s21 = smov [#allocation5]   ;;  %s1118_s23 = smov [#allocation8]  }
   0x4   :  { %s32_s22 = sshll.u32 %s1117_s21, 4  ;;  %s56_s24 = sshll.u32 %s1118_s23, 4  ;;  %s33_s22 = int_to_ptr.vmem [resolvable:$true] %s32_s22  ;;  %s1160_s24 = int_to_ptr.vmem [resolvable:$true] %s56_s24 }
   0x5   :  { %s977_s27 = scalar_lea.hbm %s1286_s1, 2048 }
   0x6   :  { %p978_p0 = scmp.ne.s32.totalorder %s1286_s1, %s977_s27  ;;  %p981_p1 = scmp.lt.u32.totalorder %s977_s27, %s1286_s1 }
   0x8   :  { %p983_p2 = pnand %p981_p1, %p978_p0 }
   0xa   :  { %986 = shalt.err (!%p983_p2)
}
   0xb   :  { %s987_s8 = scalar_lea.vmem %s33_s22, 2048  ;;  %p992_p4 = scmp.lt.s32.totalorder %s33_s22, %s33_s22 }
   0xc   :  { %p988_p3 = scmp.ne.s32.totalorder %s33_s22, %s987_s8  ;;  %p993_p5 = scmp.lt.s32.totalorder %s987_s8, %s987_s8 }
   0xe   :  { %p994_p6 = por %p993_p5, %p992_p4 }
  0x10   :  { %p995_p7 = pnand %p994_p6, %p988_p3 }
  0x12   :  { %998 = shalt.err (!%p995_p7)
}
  0x13   :  { %s1119_s9 = smov 128   ;;  %s1120_s10 = smov 8  }
  0x14   :  { %38 = dma.hbm_to_vmem [thread:$0]  %s1286_s1, 2048, %s33_s22, [#allocation6], %s1119_s9, %s1119_s9, %s1120_s10  }
  0x15   :  { %s999_s15 = scalar_lea.hbm %s1288_s3, 2048 }
  0x16   :  { %p1000_p8 = scmp.ne.s32.totalorder %s1288_s3, %s999_s15  ;;  %p1003_p9 = scmp.lt.u32.totalorder %s999_s15, %s1288_s3 }
  0x18   :  { %p1005_p10 = pnand %p1003_p9, %p1000_p8 }
  0x1a   :  { %1008 = shalt.err (!%p1005_p10)
}
  0x1b   :  { %s1009_s20 = scalar_lea.vmem %s1160_s24, 2048  ;;  %p1014_p12 = scmp.lt.s32.totalorder %s1160_s24, %s1160_s24 }
  0x1c   :  { %p1010_p11 = scmp.ne.s32.totalorder %s1160_s24, %s1009_s20  ;;  %p1015_p13 = scmp.lt.s32.totalorder %s1009_s20, %s1009_s20 }
  0x1e   :  { %p1016_p0 = por %p1015_p13, %p1014_p12 }
  0x20   :  { %p1017_p1 = pnand %p1016_p0, %p1010_p11 }
  0x22   :  { %1020 = shalt.err (!%p1017_p1)
}
  0x23   :  { %62 = dma.hbm_to_vmem [thread:$0]  %s1288_s3, 2048, %s1160_s24, [#allocation9], %s1119_s9, %s1119_s9, %s1120_s10  }
  0x24   :  { %s1121_s22 = smov [#allocation2]   ;;  %s1122_s25 = smov [#allocation7]  }
  0x25   :  { %s20_s23 = sshll.u32 %s1121_s22, 4  ;;  %s44_s26 = sshll.u32 %s1122_s25, 4  ;;  %s21_s23 = int_to_ptr.vmem [resolvable:$true] %s20_s23  ;;  %s1197_s26 = int_to_ptr.vmem [resolvable:$true] %s44_s26 }
  0x26   :  { %s1021_s29 = scalar_lea.hbm %s1285_s0, 256 }
  0x27   :  { %p1022_p2 = scmp.ne.s32.totalorder %s1285_s0, %s1021_s29  ;;  %p1025_p3 = scmp.lt.u32.totalorder %s1021_s29, %s1285_s0 }
  0x29   :  { %p1027_p4 = pnand %p1025_p3, %p1022_p2 }
  0x2b   :  { %1030 = shalt.err (!%p1027_p4)
}
  0x2c   :  { %s1031_s3 = scalar_lea.vmem %s21_s23, 256  ;;  %p1036_p6 = scmp.lt.s32.totalorder %s21_s23, %s21_s23 }
  0x2d   :  { %p1032_p5 = scmp.ne.s32.totalorder %s21_s23, %s1031_s3  ;;  %p1037_p7 = scmp.lt.s32.totalorder %s1031_s3, %s1031_s3 }
  0x2f   :  { %p1038_p8 = por %p1037_p7, %p1036_p6 }
  0x31   :  { %p1039_p9 = pnand %p1038_p8, %p1032_p5 }
  0x33   :  { %1042 = shalt.err (!%p1039_p9)
}
  0x34   :  { %26 = dma.hbm_to_vmem [thread:$0]  %s1285_s0, 256, %s21_s23, [#allocation3], %s1119_s9, %s1119_s9, %s1120_s10  }
  0x35   :  { %s1043_s15 = scalar_lea.hbm %s1287_s2, 2048 }
  0x36   :  { %p1044_p10 = scmp.ne.s32.totalorder %s1287_s2, %s1043_s15  ;;  %p1047_p11 = scmp.lt.u32.totalorder %s1043_s15, %s1287_s2 }
  0x38   :  { %p1049_p12 = pnand %p1047_p11, %p1044_p10 }
  0x3a   :  { %1052 = shalt.err (!%p1049_p12)
}
  0x3b   :  { %s1053_s20 = scalar_lea.vmem %s1197_s26, 2048  ;;  %p1058_p0 = scmp.lt.s32.totalorder %s1197_s26, %s1197_s26 }
  0x3c   :  { %p1054_p13 = scmp.ne.s32.totalorder %s1197_s26, %s1053_s20  ;;  %p1059_p1 = scmp.lt.s32.totalorder %s1053_s20, %s1053_s20 }
  0x3e   :  { %p1060_p2 = por %p1059_p1, %p1058_p0 }
  0x40   :  { %p1061_p3 = pnand %p1060_p2, %p1054_p13 }
  0x42   :  { %1064 = shalt.err (!%p1061_p3)
}
  0x43   :  { %50 = dma.hbm_to_vmem [thread:$0]  %s1287_s2, 2048, %s1197_s26, [#allocation6], %s1119_s9, %s1119_s9, %s1120_s10  }
  0x44   :  { %s1123_s21 = smov [#allocation10]   ;;  %s1065_s27 = scalar_lea.hbm %s1289_s4, 2048 }
  0x45   :  { %s68_s22 = sshll.u32 %s1123_s21, 4  ;;  %p1066_p4 = scmp.ne.s32.totalorder %s1289_s4, %s1065_s27  ;;  %s69_s22 = int_to_ptr.vmem [resolvable:$true] %s68_s22 }
  0x46   :  { %p1069_p5 = scmp.lt.u32.totalorder %s1065_s27, %s1289_s4 }
  0x48   :  { %p1071_p6 = pnand %p1069_p5, %p1066_p4 }
  0x4a   :  { %1074 = shalt.err (!%p1071_p6)
}
  0x4b   :  { %s1075_s8 = scalar_lea.vmem %s69_s22, 2048  ;;  %p1080_p8 = scmp.lt.s32.totalorder %s69_s22, %s69_s22 }
  0x4c   :  { %p1076_p7 = scmp.ne.s32.totalorder %s69_s22, %s1075_s8  ;;  %p1081_p9 = scmp.lt.s32.totalorder %s1075_s8, %s1075_s8 }
  0x4e   :  { %p1082_p10 = por %p1081_p9, %p1080_p8 }
  0x50   :  { %p1083_p11 = pnand %p1082_p10, %p1076_p7 }
  0x52   :  { %1086 = shalt.err (!%p1083_p11)
}
  0x53   :  { %74 = dma.hbm_to_vmem [thread:$0]  %s1289_s4, 2048, %s69_s22, [#allocation9], %s1119_s9, %s1119_s9, %s1120_s10  }
  0x54   :  { %1109 = dma.done.wait [#allocation3], 256  }
  0x55   :  { %1110 = vsyncadd [#allocation3], 4294967040 }
  0x56   :  { %1111 = dma.done.wait [#allocation6], 4096  }
  0x57   :  { %1112 = vsyncadd [#allocation6], 4294963200 }
  0x58   :  { %1113 = dma.done.wait [#allocation9], 4096  }
  0x59   :  { %1114 = vsyncadd [#allocation9], 4294963200  ;;  %v94_v0 = vld [vmem:[#allocation5] sm:$0xff]  ;;  %v95_v1 = vld [vmem:[#allocation5 + $0x8] sm:$0xff]  ;;  %s1124_s1 = smov [#allocation11]  }
  0x5a   :  { %v96_v2 = vld [vmem:[#allocation5 + $0x10] sm:$0xff]  ;;  %v831_v3 = vpack.c.bf16 %v95_v1, %v94_v0  ;;  %v97_v4 = vld [vmem:[#allocation5 + $0x18] sm:$0xff]  ;;  %v98_v6 = vld [vmem:[#allocation5 + $0x20] sm:$0xff]  ;;  %s598_s21 = sshll.u32 %s1124_s1, 4  ;;  %s599_s21 = int_to_ptr.vmem [resolvable:$true] %s598_s21 }
  0x5b   :  { %v835_v5 = vpack.c.bf16 %v97_v4, %v96_v2  ;;  %v99_v7 = vld [vmem:[#allocation5 + $0x28] sm:$0xff]  ;;  %v92_v9 = vld [vmem:[#allocation2] sm:$0xff]  ;;  %v101_v11 = vld [vmem:[#allocation5 + $0x38] sm:$0xff]  ;;  %s1087_s22 = scalar_lea.vmem %s599_s21, 256  ;;  %p1092_p13 = scmp.lt.s32.totalorder %s599_s21, %s599_s21 }
  0x5c   :  { %832 = vmatprep.subr.bf16.mxu0 %v831_v3  ;;  %v839_v8 = vpack.c.bf16 %v99_v7, %v98_v6  ;;  %v100_v10 = vld [vmem:[#allocation5 + $0x30] sm:$0xff]  ;;  %723 = vmatprep.mubr.f32.mxu0 %v92_v9  ;;  %v102_v13 = vld [vmem:[#allocation5 + $0x40] sm:$0xff]  ;;  %v103_v14 = vld [vmem:[#allocation5 + $0x48] sm:$0xff]  ;;  %p1088_p12 = scmp.ne.s32.totalorder %s599_s21, %s1087_s22  ;;  %p1093_p0 = scmp.lt.s32.totalorder %s1087_s22, %s1087_s22 }
  0x5d   :  { %834 = vmatpush3.bf16.msra.mxu0 %v831_v3  ;;  %v843_v12 = vpack.c.bf16 %v101_v11, %v100_v10  ;;  %v847_v15 = vpack.c.bf16 %v103_v14, %v102_v13  ;;  %v104_v16 = vld [vmem:[#allocation5 + $0x50] sm:$0xff]  ;;  %v105_v17 = vld [vmem:[#allocation5 + $0x58] sm:$0xff]  ;;  %v106_v19 = vld [vmem:[#allocation5 + $0x60] sm:$0xff] }
  0x5e   :  { %836 = vmatprep.subr.bf16.mxu0 %v835_v5  ;;  %v851_v18 = vpack.c.bf16 %v105_v17, %v104_v16  ;;  %v107_v20 = vld [vmem:[#allocation5 + $0x68] sm:$0xff]  ;;  %v108_v22 = vld [vmem:[#allocation5 + $0x70] sm:$0xff]  ;;  %v109_v23 = vld [vmem:[#allocation5 + $0x78] sm:$0xff]  ;;  %p1094_p1 = por %p1093_p0, %p1092_p13 }
  0x5f   :  { %v855_v21 = vpack.c.bf16 %v107_v20, %v106_v19  ;;  %v859_v24 = vpack.c.bf16 %v109_v23, %v108_v22  ;;  %v93_v25 = vld [vmem:[#allocation2 + $0x8] sm:$0xff]  ;;  %v227_v26 = vld [vmem:[#allocation7] sm:$0xff]  ;;  %v228_v27 = vld [vmem:[#allocation7 + $0x8] sm:$0xff] }
  0x60   :  { %v863_v28 = vpack.c.bf16 %v228_v27, %v227_v26  ;;  %v229_v29 = vld [vmem:[#allocation7 + $0x10] sm:$0xff]  ;;  %v230_v30 = vld [vmem:[#allocation7 + $0x18] sm:$0xff]  ;;  %v231_v32 = vld [vmem:[#allocation7 + $0x20] sm:$0xff]  ;;  %p1095_p2 = pnand %p1094_p1, %p1088_p12 }
  0x61   :  { %838 = vmatpush3.bf16.msra.mxu0 %v835_v5  ;;  %v867_v31 = vpack.c.bf16 %v230_v30, %v229_v29  ;;  %v232_v33 = vld [vmem:[#allocation7 + $0x28] sm:$0xff]  ;;  %v233_v35 = vld [vmem:[#allocation7 + $0x30] sm:$0xff]  ;;  %v234_v36 = vld [vmem:[#allocation7 + $0x38] sm:$0xff] }
  0x62   :  { %840 = vmatprep.subr.bf16.mxu0 %v839_v8  ;;  %864 = vmatprep.subr.bf16.mxu1 %v863_v28  ;;  %v871_v34 = vpack.c.bf16 %v232_v33, %v231_v32  ;;  %v875_v37 = vpack.c.bf16 %v234_v36, %v233_v35  ;;  %v235_v38 = vld [vmem:[#allocation7 + $0x40] sm:$0xff]  ;;  %v236_v39 = vld [vmem:[#allocation7 + $0x48] sm:$0xff]  ;;  %v237_v40 = vld [vmem:[#allocation7 + $0x50] sm:$0xff] }
  0x63   :  { %866 = vmatpush3.bf16.msra.mxu1 %v863_v28  ;;  %v879_v41 = vpack.c.bf16 %v236_v39, %v235_v38  ;;  %v238_v42 = vld [vmem:[#allocation7 + $0x58] sm:$0xff]  ;;  %v239_v44 = vld [vmem:[#allocation7 + $0x60] sm:$0xff]  ;;  %v240_v45 = vld [vmem:[#allocation7 + $0x68] sm:$0xff] }
  0x64   :  { %868 = vmatprep.subr.bf16.mxu1 %v867_v31  ;;  %v883_v43 = vpack.c.bf16 %v238_v42, %v237_v40  ;;  %v887_v46 = vpack.c.bf16 %v240_v45, %v239_v44  ;;  %v241_v47 = vld [vmem:[#allocation7 + $0x70] sm:$0xff]  ;;  %v242_v48 = vld [vmem:[#allocation7 + $0x78] sm:$0xff]  ;;  %v360_v22 = vld [vmem:[#allocation8] sm:$0xff] }
  0x65   :  { %842 = vmatpush3.bf16.msra.mxu0 %v839_v8  ;;  %v891_v49 = vpack.c.bf16 %v242_v48, %v241_v47  ;;  %v361_v23 = vld [vmem:[#allocation8 + $0x8] sm:$0xff]  ;;  %v363_v26 = vld [vmem:[#allocation8 + $0x18] sm:$0xff]  ;;  %v364_v28 = vld [vmem:[#allocation8 + $0x20] sm:$0xff] }
  0x66   :  { %844 = vmatprep.subr.bf16.mxu0 %v843_v12  ;;  %v365_v29 = vld [vmem:[#allocation8 + $0x28] sm:$0xff]  ;;  %v367_v32 = vld [vmem:[#allocation8 + $0x38] sm:$0xff]  ;;  %v372_v40 = vld [vmem:[#allocation8 + $0x60] sm:$0xff] }
  0x67   :  { %870 = vmatpush3.bf16.msra.mxu1 %v867_v31  ;;  %v903_v30 = vpack.c.bf16 %v365_v29, %v364_v28  ;;  %v366_v31 = vld [vmem:[#allocation8 + $0x30] sm:$0xff]  ;;  %v369_v35 = vld [vmem:[#allocation8 + $0x48] sm:$0xff]  ;;  %v371_v38 = vld [vmem:[#allocation8 + $0x58] sm:$0xff] }
  0x68   :  { %872 = vmatprep.subr.bf16.mxu1 %v871_v34  ;;  %v907_v33 = vpack.c.bf16 %v367_v32, %v366_v31  ;;  %v375_v44 = vld [vmem:[#allocation8 + $0x78] sm:$0xff]  ;;  %v503_v31 = vld [vmem:[#allocation10 + $0x48] sm:$0xff] }
  0x69   :  { %846 = vmatpush3.bf16.msra.mxu0 %v843_v12  ;;  %v612_v12 = vld [vmem:[%s1290_s5] ss:$0 sm:$0xff]  ;;  %v501_v28 = vld [vmem:[#allocation10 + $0x38] sm:$0xff] }
  0x6a   :  { %848 = vmatprep.subr.bf16.mxu0 %v847_v15 }
  0x6b   :  { %874 = vmatpush3.bf16.msra.mxu1 %v871_v34  ;;  %v368_v34 = vld [vmem:[#allocation8 + $0x40] sm:$0xff] }
  0x6c   :  { %876 = vmatprep.subr.bf16.mxu1 %v875_v37  ;;  %v911_v36 = vpack.c.bf16 %v369_v35, %v368_v34  ;;  %v505_v34 = vld [vmem:[#allocation10 + $0x58] sm:$0xff] }
  0x6d   :  { %850 = vmatpush3.bf16.msra.mxu0 %v847_v15  ;;  %v613_v15 = vld [vmem:[%s1290_s5 + $0x1] ss:$0 sm:$0xff] }
  0x6e   :  { %852 = vmatprep.subr.bf16.mxu0 %v851_v18 }
  0x6f   :  { %878 = vmatpush3.bf16.msra.mxu1 %v875_v37  ;;  %v370_v37 = vld [vmem:[#allocation8 + $0x50] sm:$0xff] }
  0x70   :  { %880 = vmatprep.subr.bf16.mxu1 %v879_v41  ;;  %v915_v39 = vpack.c.bf16 %v371_v38, %v370_v37  ;;  %v507_v37 = vld [vmem:[#allocation10 + $0x68] sm:$0xff] }
  0x71   :  { %854 = vmatpush3.bf16.msra.mxu0 %v851_v18 }
  0x72   :  { %856 = vmatprep.subr.bf16.mxu0 %v855_v21 }
  0x73   :  { %882 = vmatpush3.bf16.msra.mxu1 %v879_v41  ;;  %v373_v41 = vld [vmem:[#allocation8 + $0x68] sm:$0xff] }
  0x74   :  { %884 = vmatprep.subr.bf16.mxu1 %v883_v43  ;;  %v919_v42 = vpack.c.bf16 %v373_v41, %v372_v40  ;;  %v509_v40 = vld [vmem:[#allocation10 + $0x78] sm:$0xff] }
  0x75   :  { %858 = vmatpush3.bf16.msra.mxu0 %v855_v21 }
  0x76   :  { %860 = vmatprep.subr.bf16.mxu0 %v859_v24 }
  0x77   :  { %886 = vmatpush3.bf16.msra.mxu1 %v883_v43  ;;  %v374_v43 = vld [vmem:[#allocation8 + $0x70] sm:$0xff] }
  0x78   :  { %888 = vmatprep.subr.bf16.mxu1 %v887_v46  ;;  %v923_v45 = vpack.c.bf16 %v375_v44, %v374_v43 }
  0x79   :  { %862 = vmatpush3.bf16.msra.mxu0 %v859_v24  ;;  %v895_v24 = vpack.c.bf16 %v361_v23, %v360_v22  ;;  %v497_v22 = vld [vmem:[#allocation10 + $0x18] sm:$0xff] }
  0x7b   :  { %890 = vmatpush3.bf16.msra.mxu1 %v887_v46  ;;  %896 = vmatprep.subr.bf16.mxu0 %v895_v24 }
  0x7c   :  { %724 = vmatmul.mubr.f32.vlgmr.msra.gmra.mrb[0].mxu0 %v93_v25  ;;  %892 = vmatprep.subr.bf16.mxu1 %v891_v49  ;;  %v362_v25 = vld [vmem:[#allocation8 + $0x10] sm:$0xff] }
  0x7d   :  { %898 = vmatpush3.bf16.msra.mxu0 %v895_v24  ;;  %v899_v27 = vpack.c.bf16 %v363_v26, %v362_v25  ;;  %v498_v24 = vld [vmem:[#allocation10 + $0x20] sm:$0xff]  ;;  %v499_v25 = vld [vmem:[#allocation10 + $0x28] sm:$0xff] }
  0x7e   :  { %v935_v26 = vpack.c.bf16 %v499_v25, %v498_v24 }
  0x7f   :  { %894 = vmatpush3.bf16.msra.mxu1 %v891_v49  ;;  %900 = vmatprep.subr.bf16.mxu0 %v899_v27 }
  0x81   :  { %902 = vmatpush3.bf16.msra.mxu0 %v899_v27  ;;  %v500_v27 = vld [vmem:[#allocation10 + $0x30] sm:$0xff] }
  0x82   :  { %904 = vmatprep.subr.bf16.mxu0 %v903_v30  ;;  %v939_v29 = vpack.c.bf16 %v501_v28, %v500_v27 }
  0x85   :  { %906 = vmatpush3.bf16.msra.mxu0 %v903_v30  ;;  %v502_v30 = vld [vmem:[#allocation10 + $0x40] sm:$0xff] }
  0x86   :  { %908 = vmatprep.subr.bf16.mxu0 %v907_v33  ;;  %v943_v32 = vpack.c.bf16 %v503_v31, %v502_v30 }
  0x89   :  { %910 = vmatpush3.bf16.msra.mxu0 %v907_v33  ;;  %v504_v33 = vld [vmem:[#allocation10 + $0x50] sm:$0xff] }
  0x8a   :  { %912 = vmatprep.subr.bf16.mxu0 %v911_v36  ;;  %v947_v35 = vpack.c.bf16 %v505_v34, %v504_v33 }
  0x8d   :  { %914 = vmatpush3.bf16.msra.mxu0 %v911_v36  ;;  %v506_v36 = vld [vmem:[#allocation10 + $0x60] sm:$0xff] }
  0x8e   :  { %916 = vmatprep.subr.bf16.mxu0 %v915_v39  ;;  %v951_v38 = vpack.c.bf16 %v507_v37, %v506_v36 }
  0x91   :  { %918 = vmatpush3.bf16.msra.mxu0 %v915_v39  ;;  %v508_v39 = vld [vmem:[#allocation10 + $0x70] sm:$0xff] }
  0x92   :  { %920 = vmatprep.subr.bf16.mxu0 %v919_v42  ;;  %v955_v41 = vpack.c.bf16 %v509_v40, %v508_v39 }
  0x95   :  { %922 = vmatpush3.bf16.msra.mxu0 %v919_v42 }
  0x96   :  { %924 = vmatprep.subr.bf16.mxu0 %v923_v45 }
  0x99   :  { %926 = vmatpush3.bf16.msra.mxu0 %v923_v45 }
 0x14f   :  { %v725_v50 = vpop.f32.mrb[0].mxu0 }
 0x150   :  { %v196_v51 = vmul.f32 %v725_v50, %v725_v50  ;;  %v176_v52 = vpop.f32.mrb[1].mxu0 }
 0x151   :  { %v187_v53 = vadd.f32 %v725_v50, %v176_v52  ;;  %v195_v54 = vmul.f32 %v176_v52, %v176_v52 }
 0x153   :  { %v188_v55 = vrot.slane %v187_v53, 4  ;;  %v197_v56 = vadd.f32 %v196_v51, %v195_v54 }
 0x155   :  { %v189_v57 = vadd.f32 %v188_v55, %v187_v53  ;;  %v198_v58 = vrot.slane %v197_v56, 4 }
 0x157   :  { %v190_v59 = vrot.slane %v189_v57, 2  ;;  %v199_v60 = vadd.f32 %v198_v58, %v197_v56 }
 0x159   :  { %v191_v61 = vadd.f32 %v190_v59, %v189_v57  ;;  %v200_v62 = vrot.slane %v199_v60, 2 }
 0x15b   :  { %v192_v63 = vrot.slane %v191_v61, 1  ;;  %v201_v0 = vadd.f32 %v200_v62, %v199_v60 }
 0x15d   :  { %v193_v1 = vadd.f32 %v192_v63, %v191_v61  ;;  %v202_v2 = vrot.slane %v201_v0, 1 }
 0x15f   :  { %v194_v3 = vmul.f32 0.0625, %v193_v1  ;;  %v203_v4 = vadd.f32 %v202_v2, %v201_v0 }
 0x161   :  { %v204_v5 = vmul.f32 0.0625, %v203_v4  ;;  %v205_v6 = vmul.f32 %v194_v3, %v194_v3  ;;  %v207_v7 = vsub.f32 %v176_v52, %v194_v3  ;;  %v208_v8 = vsub.f32 %v725_v50, %v194_v3 }
 0x163   :  { %v206_v9 = vsub.f32 %v204_v5, %v205_v6 }
 0x165   :  { %v209_v10 = vadd.f32 1e-05, %v206_v9 }
 0x167   :  { %967 = vrsqrt.f32 %v209_v10 }
 0x171   :  { %v968_v11 = vpop.eup %967 }
 0x172   :  { %v211_v13 = vmul.f32 %v968_v11, %v207_v7  ;;  %v212_v14 = vmul.f32 %v968_v11, %v208_v8  ;;  %v614_v8 = vld [vmem:[%s1290_s5 + $0x2] ss:$0 sm:$0xff]  ;;  %v615_v11 = vld [vmem:[%s1290_s5 + $0x3] ss:$0 sm:$0xff] }
 0x174   :  { %v217_v16 = vmul.f32 %v612_v12, %v211_v13  ;;  %v218_v17 = vmul.f32 %v612_v12, %v212_v14 }
 0x176   :  { %v223_v18 = vadd.f32 %v613_v15, %v217_v16  ;;  %v224_v19 = vadd.f32 %v613_v15, %v218_v17 }
 0x178   :  { %v225_v20 = vmax.f32 %v223_v18, 0.0  ;;  %v226_v21 = vmax.f32 %v224_v19, 0.0  ;;  %v494_v18 = vld [vmem:[#allocation10] sm:$0xff]  ;;  %v495_v19 = vld [vmem:[#allocation10 + $0x8] sm:$0xff] }
 0x17a   :  { %758 = vmatprep.mubr.f32.mxu1 %v225_v20  ;;  %v927_v20 = vpack.c.bf16 %v495_v19, %v494_v18 }
 0x17b   :  { %759 = vmatmul.mubr.f32.vlgmr.msra.gmra.mrb[0].mxu1 %v226_v21  ;;  %v496_v21 = vld [vmem:[#allocation10 + $0x10] sm:$0xff] }
 0x17c   :  { %928 = vmatprep.subr.bf16.mxu1 %v927_v20  ;;  %v931_v23 = vpack.c.bf16 %v497_v22, %v496_v21 }
 0x17d   :  { %930 = vmatpush3.bf16.msra.mxu1 %v927_v20 }
 0x17e   :  { %932 = vmatprep.subr.bf16.mxu1 %v931_v23 }
 0x181   :  { %934 = vmatpush3.bf16.msra.mxu1 %v931_v23 }
 0x182   :  { %936 = vmatprep.subr.bf16.mxu1 %v935_v26 }
 0x185   :  { %938 = vmatpush3.bf16.msra.mxu1 %v935_v26 }
 0x186   :  { %940 = vmatprep.subr.bf16.mxu1 %v939_v29 }
 0x189   :  { %942 = vmatpush3.bf16.msra.mxu1 %v939_v29 }
 0x18a   :  { %944 = vmatprep.subr.bf16.mxu1 %v943_v32 }
 0x18d   :  { %946 = vmatpush3.bf16.msra.mxu1 %v943_v32 }
 0x18e   :  { %948 = vmatprep.subr.bf16.mxu1 %v947_v35 }
 0x191   :  { %950 = vmatpush3.bf16.msra.mxu1 %v947_v35 }
 0x192   :  { %952 = vmatprep.subr.bf16.mxu1 %v951_v38 }
 0x195   :  { %954 = vmatpush3.bf16.msra.mxu1 %v951_v38 }
 0x196   :  { %956 = vmatprep.subr.bf16.mxu1 %v955_v41 }
 0x199   :  { %958 = vmatpush3.bf16.msra.mxu1 %v955_v41 }
 0x24e   :  { %v760_v46 = vpop.f32.mrb[0].mxu1 }
 0x24f   :  { %v329_v47 = vmul.f32 %v760_v46, %v760_v46  ;;  %v309_v48 = vpop.f32.mrb[1].mxu1 }
 0x250   :  { %v320_v49 = vadd.f32 %v760_v46, %v309_v48  ;;  %v328_v50 = vmul.f32 %v309_v48, %v309_v48 }
 0x252   :  { %v321_v51 = vrot.slane %v320_v49, 4  ;;  %v330_v52 = vadd.f32 %v329_v47, %v328_v50 }
 0x254   :  { %v322_v53 = vadd.f32 %v321_v51, %v320_v49  ;;  %v331_v54 = vrot.slane %v330_v52, 4 }
 0x256   :  { %v323_v55 = vrot.slane %v322_v53, 2  ;;  %v332_v56 = vadd.f32 %v331_v54, %v330_v52 }
 0x258   :  { %v324_v57 = vadd.f32 %v323_v55, %v322_v53  ;;  %v333_v58 = vrot.slane %v332_v56, 2 }
 0x25a   :  { %v325_v59 = vrot.slane %v324_v57, 1  ;;  %v334_v60 = vadd.f32 %v333_v58, %v332_v56 }
 0x25c   :  { %v326_v61 = vadd.f32 %v325_v59, %v324_v57  ;;  %v335_v62 = vrot.slane %v334_v60, 1 }
 0x25e   :  { %v327_v63 = vmul.f32 0.0625, %v326_v61  ;;  %v336_v0 = vadd.f32 %v335_v62, %v334_v60 }
 0x260   :  { %v337_v1 = vmul.f32 0.0625, %v336_v0  ;;  %v338_v2 = vmul.f32 %v327_v63, %v327_v63  ;;  %v340_v3 = vsub.f32 %v309_v48, %v327_v63  ;;  %v341_v4 = vsub.f32 %v760_v46, %v327_v63 }
 0x262   :  { %v339_v5 = vsub.f32 %v337_v1, %v338_v2 }
 0x264   :  { %v342_v6 = vadd.f32 1e-05, %v339_v5 }
 0x266   :  { %969 = vrsqrt.f32 %v342_v6 }
 0x270   :  { %v970_v7 = vpop.eup %969 }
 0x271   :  { %v344_v9 = vmul.f32 %v970_v7, %v340_v3  ;;  %v345_v10 = vmul.f32 %v970_v7, %v341_v4  ;;  %v616_v4 = vld [vmem:[%s1290_s5 + $0x4] ss:$0 sm:$0xff]  ;;  %v617_v7 = vld [vmem:[%s1290_s5 + $0x5] ss:$0 sm:$0xff] }
 0x273   :  { %v350_v12 = vmul.f32 %v614_v8, %v344_v9  ;;  %v351_v13 = vmul.f32 %v614_v8, %v345_v10 }
 0x275   :  { %v356_v14 = vadd.f32 %v615_v11, %v350_v12  ;;  %v357_v15 = vadd.f32 %v615_v11, %v351_v13 }
 0x277   :  { %v358_v16 = vmax.f32 %v356_v14, 0.0  ;;  %v359_v17 = vmax.f32 %v357_v15, 0.0  ;;  %v618_v14 = vld [vmem:[%s1290_s5 + $0x6] ss:$0 sm:$0xff] }
 0x279   :  { %793 = vmatprep.mubr.f32.mxu0 %v358_v16 }
 0x27a   :  { %794 = vmatmul.mubr.f32.vlgmr.msra.gmra.mrb[2].mxu0 %v359_v17 }
 0x34d   :  { %v795_v42 = vpop.f32.mrb[2].mxu0 }
 0x34e   :  { %v462_v43 = vmul.f32 %v795_v42, %v795_v42  ;;  %v442_v44 = vpop.f32.mrb[3].mxu0 }
 0x34f   :  { %v453_v45 = vadd.f32 %v795_v42, %v442_v44  ;;  %v461_v46 = vmul.f32 %v442_v44, %v442_v44 }
 0x351   :  { %v454_v47 = vrot.slane %v453_v45, 4  ;;  %v463_v48 = vadd.f32 %v462_v43, %v461_v46 }
 0x353   :  { %v455_v49 = vadd.f32 %v454_v47, %v453_v45  ;;  %v464_v50 = vrot.slane %v463_v48, 4 }
 0x355   :  { %v456_v51 = vrot.slane %v455_v49, 2  ;;  %v465_v52 = vadd.f32 %v464_v50, %v463_v48 }
 0x357   :  { %v457_v53 = vadd.f32 %v456_v51, %v455_v49  ;;  %v466_v54 = vrot.slane %v465_v52, 2 }
 0x359   :  { %v458_v55 = vrot.slane %v457_v53, 1  ;;  %v467_v56 = vadd.f32 %v466_v54, %v465_v52 }
 0x35b   :  { %v459_v57 = vadd.f32 %v458_v55, %v457_v53  ;;  %v468_v58 = vrot.slane %v467_v56, 1 }
 0x35d   :  { %v460_v59 = vmul.f32 0.0625, %v459_v57  ;;  %v469_v60 = vadd.f32 %v468_v58, %v467_v56 }
 0x35f   :  { %v470_v61 = vmul.f32 0.0625, %v469_v60  ;;  %v471_v62 = vmul.f32 %v460_v59, %v460_v59  ;;  %v473_v63 = vsub.f32 %v442_v44, %v460_v59  ;;  %v474_v0 = vsub.f32 %v795_v42, %v460_v59 }
 0x361   :  { %v472_v1 = vsub.f32 %v470_v61, %v471_v62 }
 0x363   :  { %v475_v2 = vadd.f32 1e-05, %v472_v1 }
 0x365   :  { %971 = vrsqrt.f32 %v475_v2 }
 0x36f   :  { %v972_v3 = vpop.eup %971 }
 0x370   :  { %v477_v5 = vmul.f32 %v972_v3, %v473_v63  ;;  %v478_v6 = vmul.f32 %v972_v3, %v474_v0 }
 0x372   :  { %v483_v8 = vmul.f32 %v616_v4, %v477_v5  ;;  %v484_v9 = vmul.f32 %v616_v4, %v478_v6 }
 0x374   :  { %v489_v10 = vadd.f32 %v617_v7, %v483_v8  ;;  %v490_v11 = vadd.f32 %v617_v7, %v484_v9 }
 0x376   :  { %v491_v12 = vmax.f32 %v489_v10, 0.0  ;;  %v492_v13 = vmax.f32 %v490_v11, 0.0 }
 0x378   :  { %828 = vmatprep.mubr.f32.mxu1 %v491_v12 }
 0x379   :  { %829 = vmatmul.mubr.f32.vlgmr.msra.gmra.mrb[2].mxu1 %v492_v13 }
 0x44c   :  { %v830_v15 = vpop.f32.mrb[2].mxu1 }
 0x44d   :  { %v586_v16 = vadd.f32 %v830_v15, %v618_v14  ;;  %v580_v17 = vpop.f32.mrb[3].mxu1 }
 0x44e   :  { %v581_v18 = vadd.f32 %v618_v14, %v580_v17 }
 0x44f   :  { %973 = vtanh.f32 %v586_v16 }
 0x450   :  { %975 = vtanh.f32 %v581_v18 }
 0x459   :  { %v974_v19 = vpop.eup %973 }
 0x45a   :  { %v976_v20 = vpop.eup %975  ;;  %592 = vst [vmem:[#allocation11 + $0x8] sm:$0xff] %v974_v19 }
 0x45b   :  { %591 = vst [vmem:[#allocation11] sm:$0xff] %v976_v20 }
 0x45c   :  { %1098 = shalt.err (!%p1095_p2)
}
 0x45d   :  { %s1099_s25 = scalar_lea.hbm %s1291_s6, 256 }
 0x45e   :  { %p1100_p3 = scmp.ne.s32.totalorder %s1291_s6, %s1099_s25  ;;  %p1103_p4 = scmp.lt.u32.totalorder %s1099_s25, %s1291_s6 }
 0x460   :  { %p1105_p5 = pnand %p1103_p4, %p1100_p3 }
 0x462   :  { %1108 = shalt.err (!%p1105_p5)
}
 0x463   :  { %604 = dma.vmem_to_hbm [thread:$0]  %s599_s21, 256, %s1291_s6, [#allocation4], %s1119_s9, %s1119_s9, %s1120_s10  }
 0x464   :  { %1115 = dma.done.wait [#allocation4], 256  }
 0x465   :  { %1116 = vsyncadd [#allocation4], 4294967040 }
 0x466   :  { %608 = vsyncpa [#allocation3], 1 }
 0x467   :  { %609 = vsyncpa [#allocation6], 1 }
 0x468   :  { %610 = vsyncpa [#allocation9], 1 }
 0x469   :  { %611 = vsyncpa [#allocation4], 1 }

</bundles_post_ra>
